<compile_context>
chip_gen: v7x
topology: tpu7x:2x2x1
jax: 0.10.0
libtpu: 0.0.40
codegen_flags: <defaults>
</compile_context>

<pallas_src>
import functools

import jax
import jax.numpy as jnp
import numpy as np
from jax.experimental import pallas as pl
from jax.experimental.pallas import tpu as pltpu

GAMMA = 2.0
# TODO(synk): per-class `weight` and reduction='sum'/'none' of the PyTorch module
# are not implemented (module defaults weight=None, reduction='mean' are).


def _focal_loss_kernel(x_ref, t_ref, o_ref, *, gamma):
    x = x_ref[...].astype(jnp.float32)                  # (tn, C)
    tgt = t_ref[...]                                    # (tn, 1) int32, -1 = pad

    # numerically stable log-sum-exp over the class (lane) axis
    m = jnp.max(x, axis=-1, keepdims=True)
    z = x - m
    lse = jnp.log(jnp.sum(jnp.exp(z), axis=-1, keepdims=True))   # (tn, 1)

    # Gather z[n, target[n]] via a one-hot mask (no dynamic gather on TPU).
    # Done BEFORE the focal math so exp / pow / mul act on a (tn, 1) column only.
    col = jax.lax.broadcasted_iota(jnp.int32, z.shape, 1)
    onehot = (col == tgt).astype(jnp.float32)                    # (tn, C)
    picked_z = jnp.sum(z * onehot, axis=-1, keepdims=True)       # (tn, 1)

    logpt_t = picked_z - lse                                     # (tn, 1)
    pt_t = jnp.exp(logpt_t)
    q = 1.0 - pt_t
    g = float(gamma)
    if g == 2.0:
        focal = q * q                      # one VPU multiply instead of EUP log+exp
    elif g.is_integer() and g >= 0.0:
        focal = jnp.ones_like(q)
        for _ in range(int(g)):
            focal = focal * q
    else:
        focal = jnp.maximum(q, 0.0) ** g   # clamp avoids NaN if 1-pt rounds negative
    mod_t = focal * logpt_t                                      # (tn, 1)

    valid = tgt >= 0                                             # mask padded rows
    loss_col = jnp.where(valid, -mod_t, 0.0)                     # (tn, 1)
    partial = jnp.sum(loss_col)                                  # one reduce per tile

    # lane-dense (8, 128) store of the per-tile partial; wrapper reads [0, 0]
    o_ref[...] = jnp.full(o_ref.shape, partial, dtype=o_ref.dtype)


def _pick_tile_n(n, c, target_block_bytes=4 << 20, max_tile=4096):
    """Row tile sized for ~4 MiB per input block.

    Double-buffered input footprint is then ~8 MiB, which fits the default
    scoped VMEM on v5e/v6e and stays well inside v7x's 64 MiB physical VMEM.
    """
    rows = target_block_bytes // max(1, c * 4)
    rows = int(min(rows, max_tile))
    rows = max(8, (rows // 8) * 8)                   # multiple of 8 sublanes
    n_pad8 = ((n + 7) // 8) * 8
    return min(rows, n_pad8)


def focal_loss(x, target, gamma=GAMMA, tile_n=None):
    """x: [N, C] float, target: [N] int. Returns scalar mean focal loss."""
    N, C = x.shape
    if tile_n is None:
        tile_n = _pick_tile_n(N, C)
    tile_n = max(8, (int(tile_n) // 8) * 8)

    num_tiles = pl.cdiv(N, tile_n)
    n_pad = num_tiles * tile_n
    tgt = target.astype(jnp.int32)
    if n_pad != N:
        x = jnp.pad(x, ((0, n_pad - N), (0, 0)))
        tgt = jnp.pad(tgt, (0, n_pad - N), constant_values=-1)  # -1 never matches one-hot
    t2d = tgt.reshape(n_pad, 1)

    kernel = functools.partial(_focal_loss_kernel, gamma=float(gamma))

    partials = pl.pallas_call(
        kernel,
        out_shape=jax.ShapeDtypeStruct((num_tiles, 8, 128), jnp.float32),
        grid_spec=pltpu.PrefetchScalarGridSpec(
            num_scalar_prefetch=0,
            grid=(num_tiles,),
            in_specs=[
                pl.BlockSpec((tile_n, C), lambda i: (i, 0)),
                pl.BlockSpec((tile_n, 1), lambda i: (i, 0)),
            ],
            out_specs=pl.BlockSpec((1, 8, 128), lambda i: (i, 0, 0)),
        ),
        compiler_params=pltpu.CompilerParams(
            dimension_semantics=("parallel",),   # no cross-tile carry -> megacore OK
            vmem_limit_bytes=64 << 20,           # allow big tiles (v5e default is 16 MiB)
        ),
    )(x, t2d)

    # final reduction over per-tile partials + mean normalization (true N)
    return jnp.sum(partials[:, 0, 0]) / jnp.float32(N)


def _focal_loss_ref(x, target, gamma=GAMMA):
    x = x.astype(jnp.float32)
    logpt = jax.nn.log_softmax(x, axis=1)
    pt = jnp.exp(logpt)
    mod = (1.0 - pt) ** gamma * logpt
    picked = jnp.take_along_axis(mod, target[:, None].astype(jnp.int32), axis=1)[:, 0]
    return -jnp.mean(picked)


if __name__ == "__main__":
    key = jax.random.PRNGKey(0)

    # Case 1: small [N, C] matching the module's forward contract.
    kx, kt = jax.random.split(key)
    N, C = 16, 32
    x = jax.random.normal(kx, (N, C), dtype=jnp.float32)
    target = jax.random.randint(kt, (N,), 0, C, dtype=jnp.int32)
    loss = jax.block_until_ready(focal_loss(x, target))
    ref = jax.block_until_ready(_focal_loss_ref(x, target))
    np.testing.assert_allclose(np.asarray(loss), np.asarray(ref), rtol=1e-5, atol=1e-6)

    # Case 2: N not a multiple of the tile (exercises padding + masking + multi-tile grid).
    kx2, kt2 = jax.random.split(jax.random.PRNGKey(1))
    N2, C2 = 37, 20
    x2 = jax.random.normal(kx2, (N2, C2), dtype=jnp.float32)
    target2 = jax.random.randint(kt2, (N2,), 0, C2, dtype=jnp.int32)
    loss2 = jax.block_until_ready(focal_loss(x2, target2, tile_n=8))
    ref2 = jax.block_until_ready(_focal_loss_ref(x2, target2))
    np.testing.assert_allclose(np.asarray(loss2), np.asarray(ref2), rtol=1e-5, atol=1e-6)

    print("KERNEL_OK")
</pallas_src>

<mosaic_0001>
module attributes {stable_mosaic.version = 11 : i64} {
  func.func @_focal_loss_kernel(%arg0: i32, %arg1: memref<16x32xf32, #tpu.memory_space<vmem>>, %arg2: memref<16x1xi32, #tpu.memory_space<vmem>>, %arg3: memref<1x8x128xf32, #tpu.memory_space<vmem>>) attributes {dimension_semantics = [#tpu.dimension_semantics<parallel>], iteration_bounds = array<i64: 1>, scalar_prefetch = 0 : i64, scratch_operands = 0 : i64, tpu.core_type = #tpu.core_type<tc>, window_params = [{transform_indices = @transform_0, window_bounds = array<i64: 16, 32>}, {transform_indices = @transform_1, window_bounds = array<i64: 16, 1>}, {transform_indices = @transform_2, window_bounds = array<i64: 1, 8, 128>}]} {
    %c0 = arith.constant 0 : index
    %c0_0 = arith.constant 0 : index
    %0 = vector.load %arg1[%c0, %c0_0] : memref<16x32xf32, #tpu.memory_space<vmem>>, vector<16x32xf32>
    %c0_1 = arith.constant 0 : index
    %c0_2 = arith.constant 0 : index
    %1 = vector.load %arg2[%c0_1, %c0_2] : memref<16x1xi32, #tpu.memory_space<vmem>>, vector<16x1xi32>
    %cst = arith.constant dense<0xFF800000> : vector<16xf32>
    %2 = vector.multi_reduction <maximumf>, %0, %cst [1] : vector<16x32xf32> to vector<16xf32>
    %3 = vector.shape_cast %2 : vector<16xf32> to vector<16x1xf32>
    %4 = vector.broadcast %3 : vector<16x1xf32> to vector<16x32xf32>
    %5 = arith.subf %0, %4 : vector<16x32xf32>
    %6 = math.exp %5 : vector<16x32xf32>
    %cst_3 = arith.constant dense<0.000000e+00> : vector<16xf32>
    %7 = vector.multi_reduction <add>, %6, %cst_3 [1] : vector<16x32xf32> to vector<16xf32>
    %8 = vector.shape_cast %7 : vector<16xf32> to vector<16x1xf32>
    %9 = math.log %8 : vector<16x1xf32>
    %10 = tpu.iota {dimensions = array<i32: 1>} : vector<16x32xi32>
    %11 = vector.broadcast %1 : vector<16x1xi32> to vector<16x32xi32>
    %12 = arith.cmpi eq, %10, %11 : vector<16x32xi32>
    %13 = arith.extui %12 : vector<16x32xi1> to vector<16x32xi32>
    %14 = arith.sitofp %13 : vector<16x32xi32> to vector<16x32xf32>
    %15 = arith.mulf %5, %14 : vector<16x32xf32>
    %cst_4 = arith.constant dense<0.000000e+00> : vector<16xf32>
    %16 = vector.multi_reduction <add>, %15, %cst_4 [1] : vector<16x32xf32> to vector<16xf32>
    %17 = vector.shape_cast %16 : vector<16xf32> to vector<16x1xf32>
    %18 = arith.subf %17, %9 : vector<16x1xf32>
    %19 = math.exp %18 : vector<16x1xf32>
    %cst_5 = arith.constant 1.000000e+00 : f32
    %20 = vector.broadcast %cst_5 : f32 to vector<16x1xf32>
    %21 = arith.subf %20, %19 : vector<16x1xf32>
    %22 = arith.mulf %21, %21 : vector<16x1xf32>
    %23 = arith.mulf %22, %18 : vector<16x1xf32>
    %c0_i32 = arith.constant 0 : i32
    %24 = vector.broadcast %c0_i32 : i32 to vector<16x1xi32>
    %25 = arith.cmpi sge, %1, %24 : vector<16x1xi32>
    %cst_6 = arith.constant 0.000000e+00 : f32
    %26 = vector.broadcast %cst_6 : f32 to vector<16x1xf32>
    %27 = arith.subf %26, %23 : vector<16x1xf32>
    %cst_7 = arith.constant 0.000000e+00 : f32
    %28 = vector.broadcast %cst_7 : f32 to vector<16x1xf32>
    %29 = arith.select %25, %27, %28 : vector<16x1xi1>, vector<16x1xf32>
    %30 = vector.shape_cast %29 : vector<16x1xf32> to vector<1x16x1xf32>
    %cst_8 = arith.constant dense<0.000000e+00> : vector<1xf32>
    %31 = vector.multi_reduction <add>, %30, %cst_8 [1, 2] : vector<1x16x1xf32> to vector<1xf32>
    %32 = vector.shape_cast %31 : vector<1xf32> to vector<1x1x1xf32>
    %33 = vector.extract %32[0, 0, 0] : f32 from vector<1x1x1xf32>
    %34 = vector.broadcast %33 : f32 to vector<1x8x128xf32>
    %c0_9 = arith.constant 0 : index
    %c0_10 = arith.constant 0 : index
    %c0_11 = arith.constant 0 : index
    %35 = vector.load %arg3[%c0_9, %c0_10, %c0_11] : memref<1x8x128xf32, #tpu.memory_space<vmem>>, vector<1x8x128xf32>
    tpu.vector_store %arg3[%c0_9, %c0_10, %c0_11], %34 {strides = array<i32>} : memref<1x8x128xf32, #tpu.memory_space<vmem>>, vector<1x8x128xf32>,
    return
  }
  func.func @transform_0(%arg0: i32) -> (i32, i32) {
    %c0_i32 = arith.constant 0 : i32
    %c0_i32_0 = arith.constant 0 : i32
    return %arg0, %c0_i32 : i32, i32
  }
  func.func @transform_1(%arg0: i32) -> (i32, i32) {
    %c0_i32 = arith.constant 0 : i32
    %c0_i32_0 = arith.constant 0 : i32
    return %arg0, %c0_i32 : i32, i32
  }
  func.func @transform_2(%arg0: i32) -> (i32, i32, i32) {
    %c0_i32 = arith.constant 0 : i32
    %c0_i32_0 = arith.constant 0 : i32
    %c0_i32_1 = arith.constant 0 : i32
    return %arg0, %c0_i32, %c0_i32_0 : i32, i32, i32
  }
}

</mosaic_0001>

<bundles_post_ra>
// kernel: tpu_custom_call.1
= control target key start
LH: loop header
LB: loop body
LE: loop exit
PB: predicated region body
PF: predicated region fallthrough
CT: control target
= control target key end

     0   :  { %7 = vsyncpa [#allocation3], 0  ;;  %s307_s0 = inlined_call_operand.hbm [shape: f32[16,32], index: 0, kind: input, shape index: {}]   ;;  %s308_s1 = inlined_call_operand.hbm [shape: s32[16,1], index: 1, kind: input, shape index: {}]   ;;  %s309_s2 = inlined_call_operand.hbm [shape: f32[1,8,128], index: 2, kind: output, shape index: {}]  }
   0x1   :  { %8 = vsyncpa [#allocation6], 0 }
   0x2   :  { %9 = vsyncpa [#allocation4], 0  ;;  %s235_s9 = smov [#allocation2]   ;;  %s163_s13 = scalar_lea.hbm %s307_s0, 256 }
   0x3   :  { %s15_s10 = sshll.u32 %s235_s9, 4  ;;  %p164_p0 = scmp.ne.s32.totalorder %s307_s0, %s163_s13  ;;  %s16_s10 = int_to_ptr.vmem [resolvable:$true] %s15_s10 }
   0x4   :  { %p167_p1 = scmp.lt.u32.totalorder %s163_s13, %s307_s0 }
   0x6   :  { %p169_p2 = pnand %p167_p1, %p164_p0 }
   0x8   :  { %172 = shalt.err (!%p169_p2)
}
   0x9   :  { %s173_s18 = scalar_lea.vmem %s16_s10, 256  ;;  %p178_p4 = scmp.lt.s32.totalorder %s16_s10, %s16_s10 }
   0xa   :  { %p174_p3 = scmp.ne.s32.totalorder %s16_s10, %s173_s18  ;;  %p179_p5 = scmp.lt.s32.totalorder %s173_s18, %s173_s18 }
   0xc   :  { %p180_p6 = por %p179_p5, %p178_p4 }
   0xe   :  { %p181_p7 = pnand %p180_p6, %p174_p3 }
  0x10   :  { %184 = shalt.err (!%p181_p7)
}
  0x11   :  { %s236_s19 = smov 128   ;;  %s237_s20 = smov 8  }
  0x12   :  { %21 = dma.hbm_to_vmem [thread:$0]  %s307_s0, 256, %s16_s10, [#allocation3], %s236_s19, %s236_s19, %s237_s20  }
  0x13   :  { %s238_s23 = smov [#allocation5]   ;;  %s185_s27 = scalar_lea.hbm %s308_s1, 256 }
  0x14   :  { %s27_s24 = sshll.u32 %s238_s23, 4  ;;  %p186_p8 = scmp.ne.s32.totalorder %s308_s1, %s185_s27  ;;  %s28_s24 = int_to_ptr.vmem [resolvable:$true] %s27_s24 }
  0x15   :  { %p189_p9 = scmp.lt.u32.totalorder %s185_s27, %s308_s1 }
  0x17   :  { %p191_p10 = pnand %p189_p9, %p186_p8 }
  0x19   :  { %194 = shalt.err (!%p191_p10)
}
  0x1a   :  { %s195_s4 = scalar_lea.vmem %s28_s24, 256  ;;  %p200_p12 = scmp.lt.s32.totalorder %s28_s24, %s28_s24 }
  0x1b   :  { %p196_p11 = scmp.ne.s32.totalorder %s28_s24, %s195_s4  ;;  %p201_p13 = scmp.lt.s32.totalorder %s195_s4, %s195_s4 }
  0x1d   :  { %p202_p0 = por %p201_p13, %p200_p12 }
  0x1f   :  { %p203_p1 = pnand %p202_p0, %p196_p11 }
  0x21   :  { %206 = shalt.err (!%p203_p1)
}
  0x22   :  { %33 = dma.hbm_to_vmem [thread:$0]  %s308_s1, 256, %s28_s24, [#allocation6], %s236_s19, %s236_s19, %s237_s20  }
  0x23   :  { %229 = dma.done.wait [#allocation3], 256  }
  0x24   :  { %230 = vsyncadd [#allocation3], 4294967040 }
  0x25   :  { %231 = dma.done.wait [#allocation6], 256  }
  0x26   :  { %232 = vsyncadd [#allocation6], 4294967040  ;;  %v239_v0 = vmov 0   ;;  %vm44_vm0 = vcmask 261120   ;;  %v40_v1 = vld [vmem:[#allocation2] sm:$0xff]  ;;  %v41_v2 = vld [vmem:[#allocation2 + $0x8] sm:$0xff]  ;;  %v67_v9 = vlaneseq }
  0x27   :  { %149 = vset.pattern.permute.xlu1 %v239_v0  ;;  %150 = vset.pattern.permute.xlu0 %v239_v0  ;;  %v281_v3 = vld [vmem:[#allocation5] sm:$0xff]  ;;  %v45_v4 = vsel %vm44_vm0, %v40_v1, -inf  ;;  %v285_v5 = vld [vmem:[#allocation5 + $0x8] sm:$0xff]  ;;  %v48_v6 = vsel %vm44_vm0, %v41_v2, -inf  ;;  %v240_v17 = vmov 0.0   ;;  %vm107_vm5 = vcmask 7168  }
  0x28   :  { %70 = vperm.xlu1 %149, %v281_v3   ;;  %46 = vmax.xlane.f32.xlu0 %v45_v4  ;;  %v68_v14 = vand.u32 127, %v67_v9  ;;  %vm101_vm3 = vcmp.ge.s32.totalorder %v281_v3, 0  ;;  %vm102_vm4 = vcmp.ge.s32.totalorder %v285_v5, 0  ;;  %s241_s1 = smov [#allocation7]  }
  0x29   :  { %s128_s6 = sshll.u32 %s241_s1, 4  ;;  %s129_s6 = int_to_ptr.vmem [resolvable:$true] %s128_s6 }
  0x2a   :  { %s207_s8 = scalar_lea.vmem %s129_s6, 128  ;;  %p212_p3 = scmp.lt.s32.totalorder %s129_s6, %s129_s6 }
  0x2b   :  { %p208_p2 = scmp.ne.s32.totalorder %s129_s6, %s207_s8  ;;  %p213_p4 = scmp.lt.s32.totalorder %s207_s8, %s207_s8 }
  0x2c   :  { %73 = vperm.xlu1 %149, %v285_v5   ;;  %49 = vmax.xlane.f32.xlu0 %v48_v6 }
  0x2d   :  { %p214_p5 = por %p213_p4, %p212_p3 }
  0x2f   :  { %p215_p6 = pnand %p214_p5, %p208_p2 }
  0xa7   :  { %v71_v12 = vpop.permute.xlu1 %70 }
  0xa8   :  { %vm75_vm1 = vcmp.eq.s32.totalorder %v68_v14, %v71_v12 }
  0xa9   :  { %v138_v18 = vsel %vm75_vm1, 1.0, %v240_v17 }
  0xab   :  { %v74_v16 = vpop.permute.xlu1 %73 }
  0xac   :  { %vm76_vm2 = vcmp.eq.s32.totalorder %v68_v14, %v74_v16 }
  0xad   :  { %v139_v22 = vsel %vm76_vm2, 1.0, %v240_v17 }
  0xb5   :  { %v47_v7 = vpop.xlane.xlu0 %46 }
  0xb6   :  { %v51_v8 = vsub.f32 %v40_v1, %v47_v7 }
  0xb8   :  { %v53_v10 = vmul.f32 1.442695, %v51_v8  ;;  %v81_v21 = vmul.f32 %v138_v18, %v51_v8 }
  0xb9   :  { %v50_v11 = vpop.xlane.xlu0 %49 }
  0xba   :  { %151 = vpow2.f32 %v53_v10  ;;  %v52_v13 = vsub.f32 %v41_v2, %v50_v11  ;;  %v83_v24 = vsel %vm44_vm0, %v81_v21, 0.0 }
  0xbc   :  { %v55_v15 = vmul.f32 1.442695, %v52_v13  ;;  %v82_v26 = vmul.f32 %v139_v22, %v52_v13 }
  0xbe   :  { %153 = vpow2.f32 %v55_v15  ;;  %v86_v27 = vsel %vm44_vm0, %v82_v26, 0.0 }
  0xc4   :  { %v152_v19 = vpop.eup %151 }
  0xc5   :  { %v57_v20 = vsel %vm44_vm0, %v152_v19, 0.0 }
  0xc6   :  { %58 = vadd.xlane.f32.xlu0 %v57_v20 }
  0xc8   :  { %v154_v23 = vpop.eup %153 }
  0xc9   :  { %v60_v25 = vsel %vm44_vm0, %v154_v23, 0.0 }
  0xca   :  { %84 = vadd.xlane.f32.xlu0 %v83_v24  ;;  %61 = vadd.xlane.f32.xlu1 %v60_v25 }
  0xce   :  { %87 = vadd.xlane.f32.xlu0 %v86_v27 }
 0x153   :  { %v59_v28 = vpop.xlane.xlu0 %58 }
 0x154   :  { %155 = vlog2.f32 %v59_v28 }
 0x157   :  { %v62_v29 = vpop.xlane.xlu1 %61  ;;  %v85_v31 = vpop.xlane.xlu0 %84 }
 0x158   :  { %157 = vlog2.f32 %v62_v29 }
 0x15b   :  { %v88_v37 = vpop.xlane.xlu0 %87 }
 0x15e   :  { %v156_v30 = vpop.eup %155 }
 0x15f   :  { %v64_v32 = vmul.f32 0.6931472, %v156_v30 }
 0x161   :  { %v89_v33 = vsub.f32 %v85_v31, %v64_v32 }
 0x162   :  { %v158_v34 = vpop.eup %157 }
 0x163   :  { %v91_v35 = vmul.f32 1.442695, %v89_v33  ;;  %v66_v36 = vmul.f32 0.6931472, %v158_v34 }
 0x165   :  { %159 = vpow2.f32 %v91_v35  ;;  %v90_v38 = vsub.f32 %v88_v37, %v66_v36 }
 0x167   :  { %v93_v39 = vmul.f32 1.442695, %v90_v38 }
 0x169   :  { %161 = vpow2.f32 %v93_v39 }
 0x16f   :  { %v160_v40 = vpop.eup %159 }
 0x170   :  { %v95_v41 = vsub.f32 1.0, %v160_v40 }
 0x172   :  { %v97_v42 = vmul.f32 %v95_v41, %v95_v41 }
 0x173   :  { %v162_v43 = vpop.eup %161 }
 0x174   :  { %v99_v44 = vmul.f32 %v97_v42, %v89_v33  ;;  %v96_v45 = vsub.f32 1.0, %v162_v43 }
 0x176   :  { %v103_v46 = vsub.f32 0.0, %v99_v44  ;;  %v98_v47 = vmul.f32 %v96_v45, %v96_v45 }
 0x178   :  { %v100_v48 = vmul.f32 %v98_v47, %v90_v38  ;;  %v105_v50 = vsel %vm101_vm3, %v103_v46, 0.0 }
 0x179   :  { %v108_v52 = vsel %vm107_vm5, %v105_v50, 0.0 }
 0x17a   :  { %v104_v49 = vsub.f32 0.0, %v100_v48 }
 0x17c   :  { %v106_v51 = vsel %vm102_vm4, %v104_v49, 0.0 }
 0x17d   :  { %v109_v53 = vsel %vm107_vm5, %v106_v51, 0.0 }
 0x17e   :  { %v110_v54 = vadd.f32 %v109_v53, %v108_v52 }
 0x180   :  { %111 = vadd.xlane.f32.xlu0 %v110_v54 }
 0x20d   :  { %v112_v55 = vpop.xlane.xlu0 %111 }
 0x20e   :  { %v113_v56 = vrot.slane %v112_v55, 4 }
 0x210   :  { %v114_v57 = vadd.f32 %v113_v56, %v112_v55 }
 0x212   :  { %v115_v58 = vrot.slane %v114_v57, 2 }
 0x214   :  { %v116_v59 = vadd.f32 %v115_v58, %v114_v57 }
 0x216   :  { %v117_v60 = vrot.slane %v116_v59, 1 }
 0x218   :  { %v118_v61 = vadd.f32 %v117_v60, %v116_v59 }
 0x21a   :  { %140 = vpush %v118_v61 }
 0x24b   :  { %s141_s7 = spop %140 }
 0x24c   :  { %v120_v62 = vstv %s141_s7 }
 0x24d   :  { %121 = vst [vmem:[#allocation7] sm:$0xff] %v120_v62 }
 0x24e   :  { %218 = shalt.err (!%p215_p6)
}
 0x24f   :  { %s219_s11 = scalar_lea.hbm %s309_s2, 128 }
 0x250   :  { %p220_p7 = scmp.ne.s32.totalorder %s309_s2, %s219_s11  ;;  %p223_p8 = scmp.lt.u32.totalorder %s219_s11, %s309_s2 }
 0x252   :  { %p225_p9 = pnand %p223_p8, %p220_p7 }
 0x254   :  { %228 = shalt.err (!%p225_p9)
}
 0x255   :  { %131 = dma.vmem_to_hbm [thread:$0]  %s129_s6, 128, %s309_s2, [#allocation4]  }
 0x256   :  { %233 = dma.done.wait [#allocation4], 128  }
 0x257   :  { %234 = vsyncadd [#allocation4], 4294967168 }
 0x258   :  { %135 = vsyncpa [#allocation3], 1 }
 0x259   :  { %136 = vsyncpa [#allocation6], 1 }
 0x25a   :  { %137 = vsyncpa [#allocation4], 1 }

</bundles_post_ra>
